<compile_context>
chip_gen: v5e
topology: v5e:2x2
jax: 0.10.0
libtpu: 0.0.40
codegen_flags: <defaults>
</compile_context>

<pallas_src>
import functools

import jax
import jax.numpy as jnp
from jax.experimental import pallas as pl
from jax.experimental.pallas import tpu as pltpu

BN_EPS = 1e-5


def _stats_kernel(x_ref, w1_ref, sum_ref, sumsq_ref, *, n_rows, tiles_per_split):
    """Accumulate per-split sum(h) and sum(h*h) for h = x @ w1 (f32 accum)."""
    i = pl.program_id(1)

    @pl.when(i == 0)
    def _init():
        sum_ref[...] = jnp.zeros_like(sum_ref)
        sumsq_ref[...] = jnp.zeros_like(sumsq_ref)

    tn = x_ref.shape[0]
    c_hid = w1_ref.shape[1]
    h = jnp.dot(x_ref[...], w1_ref[...], preferred_element_type=jnp.float32)

    # Mask ragged-tail / phantom-tile rows so garbage in partially-OOB input
    # blocks never reaches the statistics.
    tile = pl.program_id(0) * tiles_per_split + i
    row = tile * tn + jax.lax.broadcasted_iota(jnp.int32, (tn, 1), 0)
    valid = row < n_rows
    hs = jnp.where(valid, h, 0.0)
    hsq = jnp.where(valid, h * h, 0.0)

    # Layout-preserving (sublane-group) reshape -> axis-0 sum is ~tn/8 vadds
    # per accumulator on the VPU; the MXU only ever sees the real x @ w1.
    sum_ref[...] += jnp.sum(hs.reshape(tn // 8, 8, c_hid), axis=0)
    sumsq_ref[...] += jnp.sum(hsq.reshape(tn // 8, 8, c_hid), axis=0)


def _apply_kernel(x_ref, w1_ref, sums_ref, sumsqs_ref, gamma_ref, beta_ref,
                  w2_ref, b2_ref, o_ref, *, inv_n):
    """out = relu( relu((x @ w1) * scale + shift) @ w2 + b2 )."""
    # Fold BN into scale/shift from the phase-1 partial sums. Tiny [1, C_hid]
    # math (sublane reduce + EUP rsqrt) recomputed per tile: cheaper than an
    # extra XLA dispatch between the pallas_calls and safe under megacore
    # sharding of the row axis.
    mean = jnp.sum(sums_ref[...], axis=0, keepdims=True) * inv_n
    ex2 = jnp.sum(sumsqs_ref[...], axis=0, keepdims=True) * inv_n
    # NOTE: E[h^2]-E[h]^2 can cancel when |mean| >> std; acceptable here since
    # pre-BN activations are O(1). Switch to a shifted/two-pass scheme if not.
    var = jnp.maximum(ex2 - mean * mean, 0.0)            # biased variance
    scale = gamma_ref[...] * jax.lax.rsqrt(var + BN_EPS)
    shift = beta_ref[...] - mean * scale

    h = jnp.dot(x_ref[...], w1_ref[...], preferred_element_type=jnp.float32)
    h = jnp.maximum(h * scale + shift, 0.0)              # fused BN + ReLU (one FMA)
    y = jnp.dot(h.astype(w2_ref.dtype), w2_ref[...],
                preferred_element_type=jnp.float32) + b2_ref[...]
    o_ref[...] = jnp.maximum(y, 0.0).astype(o_ref.dtype)  # output activation


def _vmem_capacity_bytes():
    try:
        cap = getattr(pltpu.get_tpu_info(), "vmem_capacity_bytes", None)
        if cap:
            return int(cap)
    except Exception:
        pass
    return 64 << 20   # conservative fallback: v7x per-TensorCore VMEM


def node_decoder(x, w1, b1, gamma, beta, w2, b2, *, block_rows=4096):
    """Fused NodeDecoder forward (training-mode BatchNorm batch statistics)."""
    # b1 is accepted for parameter parity with the PyTorch module but is
    # mathematically dead here: train-mode BatchNorm subtracts the batch mean,
    # absorbing any constant per-feature offset added by Linear1's bias.
    del b1

    n_true, c_in = x.shape
    c_hid = w1.shape[1]
    c_out = w2.shape[1]

    # bf16 MXU operands (native on v5e/v6e/v7x); all accumulation / statistics
    # / elementwise math stays f32.
    xb = x.astype(jnp.bfloat16)
    w1b = w1.astype(jnp.bfloat16)
    w2b = w2.astype(jnp.bfloat16)
    gamma = gamma.reshape(1, -1).astype(jnp.float32)
    beta = beta.reshape(1, -1).astype(jnp.float32)
    b2 = b2.reshape(1, -1).astype(jnp.float32)

    # Only micro-batches (< 8 rows) get padded; general ragged N is handled
    # in-kernel (no jnp.pad / out[:n] HBM re-streaming).
    if n_true < 8:
        xb = jnp.pad(xb, ((0, 8 - n_true), (0, 0)))
    nr = xb.shape[0]

    # Generation-aware row tile: keep double-buffered x/out tiles + resident
    # weights inside a fraction of this chip's VMEM (64 MiB/TC on v7x, 128 MiB
    # on v5e/v6e) while amortizing the ~0.35us per-grid-step overhead.
    budget = int(_vmem_capacity_bytes() * 0.6)
    bytes_per_row = 2 * (2 * c_in) + 2 * (4 * c_out)       # 2x-buffered bf16 x + f32 out
    resident = 2 * (c_in * c_hid + c_hid * c_out) + 4 * (40 * c_hid + c_out) + (256 << 10)
    rows_cap = max(8, ((budget - resident) // max(bytes_per_row, 1)) // 8 * 8)
    block_rows = max(8, (block_rows // 8) * 8)
    tn = int(max(8, min(block_rows, rows_cap, (nr // 8) * 8)))

    num_tiles = pl.cdiv(nr, tn)
    # v7x: split the phase-1 reduction across both TensorCores via a leading
    # "parallel" axis with per-core partial accumulators (harmless on 1-TC
    # v5e/v6e, where it is just a 2-iteration outer loop).
    n_split = 2 if num_tiles >= 2 else 1
    tiles_per_split = pl.cdiv(num_tiles, n_split)

    if n_split * tiles_per_split != num_tiles:
        # Phantom trailing tile(s): clamp the input block index to the last
        # real tile; the in-kernel row mask zeroes their contribution.
        x_map1 = lambda s, i: (jnp.minimum(s * tiles_per_split + i, num_tiles - 1), 0)
    else:
        x_map1 = lambda s, i: (s * tiles_per_split + i, 0)

    # ---- phase 1: batch-global first/second moments of h = x @ w1 ----------
    sums, sumsqs = pl.pallas_call(
        functools.partial(_stats_kernel, n_rows=n_true,
                          tiles_per_split=tiles_per_split),
        out_shape=(jax.ShapeDtypeStruct((8 * n_split, c_hid), jnp.float32),
                   jax.ShapeDtypeStruct((8 * n_split, c_hid), jnp.float32)),
        grid=(n_split, tiles_per_split),
        in_specs=[
            pl.BlockSpec((tn, c_in), x_map1),
            pl.BlockSpec((c_in, c_hid), lambda s, i: (0, 0)),
        ],
        out_specs=(
            pl.BlockSpec((8, c_hid), lambda s, i: (s, 0)),
            pl.BlockSpec((8, c_hid), lambda s, i: (s, 0)),
        ),
        compiler_params=pltpu.CompilerParams(
            dimension_semantics=("parallel", "arbitrary"),
            vmem_limit_bytes=budget),
    )(xb, w1b)

    # ---- phase 2: recompute h, fused BN+ReLU, Linear2 (+b2), ReLU ----------
    out = pl.pallas_call(
        functools.partial(_apply_kernel, inv_n=1.0 / n_true),
        out_shape=jax.ShapeDtypeStruct((nr, c_out), jnp.float32),
        grid=(num_tiles,),
        in_specs=[
            pl.BlockSpec((tn, c_in), lambda i: (i, 0)),
            pl.BlockSpec((c_in, c_hid), lambda i: (0, 0)),
            pl.BlockSpec((8 * n_split, c_hid), lambda i: (0, 0)),
            pl.BlockSpec((8 * n_split, c_hid), lambda i: (0, 0)),
            pl.BlockSpec((1, c_hid), lambda i: (0, 0)),
            pl.BlockSpec((1, c_hid), lambda i: (0, 0)),
            pl.BlockSpec((c_hid, c_out), lambda i: (0, 0)),
            pl.BlockSpec((1, c_out), lambda i: (0, 0)),
        ],
        out_specs=pl.BlockSpec((tn, c_out), lambda i: (i, 0)),
        compiler_params=pltpu.CompilerParams(
            dimension_semantics=("parallel",),
            vmem_limit_bytes=budget),
    )(xb, w1b, sums, sumsqs, gamma, beta, w2b, b2)

    return out if nr == n_true else out[:n_true]


def node_decoder_ref(x, w1, b1, gamma, beta, w2, b2):
    h = x @ w1 + b1
    mean = jnp.mean(h, axis=0, keepdims=True)
    var = jnp.mean((h - mean) ** 2, axis=0, keepdims=True)
    h = (h - mean) / jnp.sqrt(var + BN_EPS) * gamma.reshape(1, -1) + beta.reshape(1, -1)
    h = jnp.maximum(h, 0.0)
    y = h @ w2 + b2.reshape(1, -1)
    return jnp.maximum(y, 0.0)


def _make_params(key, c_in, c_hid, c_out):
    kw1, kb1, kw2, kb2 = jax.random.split(key, 4)
    bound1 = 1.0 / jnp.sqrt(c_in)
    w1 = jax.random.uniform(kw1, (c_in, c_hid), jnp.float32, -bound1, bound1)
    b1 = jax.random.uniform(kb1, (1, c_hid), jnp.float32, -bound1, bound1)
    gamma = jnp.ones((1, c_hid), jnp.float32)    # BatchNorm1d weight init
    beta = jnp.zeros((1, c_hid), jnp.float32)    # BatchNorm1d bias init
    bound2 = 1.0 / jnp.sqrt(c_hid)
    w2 = jax.random.uniform(kw2, (c_hid, c_out), jnp.float32, -bound2, bound2)
    b2 = jax.random.uniform(kb2, (1, c_out), jnp.float32, -bound2, bound2)
    return w1, b1, gamma, beta, w2, b2


if __name__ == "__main__":
    C_in, C_hid, C_out = 16, 32, 16
    key = jax.random.PRNGKey(0)
    kx1, kx2, kx3, kp = jax.random.split(key, 4)
    w1, b1, gamma, beta, w2, b2 = _make_params(kp, C_in, C_hid, C_out)

    # bf16 MXU inputs (f32 accumulation) -> tolerance loosened vs pure f32.
    def check(x, name, **kw):
        out = jax.block_until_ready(
            node_decoder(x, w1, b1, gamma, beta, w2, b2, **kw))
        ref = node_decoder_ref(x, w1, b1, gamma, beta, w2, b2)
        assert out.shape == ref.shape, f"shape mismatch ({name})"
        assert jnp.allclose(out, ref, atol=3e-2, rtol=3e-2), f"mismatch ({name})"

    # 1) single exact tile
    check(jax.random.normal(kx1, (8, C_in), jnp.float32), "N=8")
    # 2) multi-tile + ragged tail + phantom-tile clamp on the 2-way split
    check(jax.random.normal(kx2, (300, C_in), jnp.float32), "N=300/tile128",
          block_rows=128)
    # 3) default tile path with a ragged tail (one tile per reduction split)
    check(jax.random.normal(kx2, (300, C_in), jnp.float32), "N=300/default")
    # 4) micro-batch (< 8 rows) pad path
    check(jax.random.normal(kx3, (5, C_in), jnp.float32), "N=5")

    print("KERNEL_OK")
</pallas_src>

<mosaic_0001>
module attributes {stable_mosaic.version = 11 : i64} {
  func.func @_stats_kernel(%arg0: i32, %arg1: i32, %arg2: memref<8x16xbf16, #tpu.memory_space<vmem>>, %arg3: memref<16x32xbf16, #tpu.memory_space<vmem>>, %arg4: memref<8x32xf32, #tpu.memory_space<vmem>>, %arg5: memref<8x32xf32, #tpu.memory_space<vmem>>) attributes {dimension_semantics = [#tpu.dimension_semantics<parallel>, #tpu.dimension_semantics<arbitrary>], iteration_bounds = array<i64: 1, 1>, scalar_prefetch = 0 : i64, scratch_operands = 0 : i64, tpu.core_type = #tpu.core_type<tc>, window_params = [{transform_indices = @transform_0, window_bounds = array<i64: 8, 16>}, {pipeline_mode = #tpu.pipeline_mode<synchronous>, transform_indices = @transform_1, window_bounds = array<i64: 16, 32>}, {transform_indices = @transform_2, window_bounds = array<i64: 8, 32>}, {transform_indices = @transform_3, window_bounds = array<i64: 8, 32>}]} {
    %c0_i32 = arith.constant 0 : i32
    %0 = arith.cmpi eq, %arg1, %c0_i32 : i32
    %1 = arith.extui %0 : i1 to i32
    %c0_i32_0 = arith.constant 0 : i32
    %2 = arith.cmpi ne, %1, %c0_i32_0 : i32
    scf.if %2 {
      %cst_17 = arith.constant 0.000000e+00 : f32
      %33 = vector.broadcast %cst_17 : f32 to vector<8x32xf32>
      %c0_18 = arith.constant 0 : index
      %c0_19 = arith.constant 0 : index
      %34 = vector.load %arg4[%c0_18, %c0_19] : memref<8x32xf32, #tpu.memory_space<vmem>>, vector<8x32xf32>
      tpu.vector_store %arg4[%c0_18, %c0_19], %33 {strides = array<i32>} : memref<8x32xf32, #tpu.memory_space<vmem>>, vector<8x32xf32>,
      %cst_20 = arith.constant 0.000000e+00 : f32
      %35 = vector.broadcast %cst_20 : f32 to vector<8x32xf32>
      %c0_21 = arith.constant 0 : index
      %c0_22 = arith.constant 0 : index
      %36 = vector.load %arg5[%c0_21, %c0_22] : memref<8x32xf32, #tpu.memory_space<vmem>>, vector<8x32xf32>
      tpu.vector_store %arg5[%c0_21, %c0_22], %35 {strides = array<i32>} : memref<8x32xf32, #tpu.memory_space<vmem>>, vector<8x32xf32>,
    } else {
    }
    %c0 = arith.constant 0 : index
    %c0_1 = arith.constant 0 : index
    %3 = vector.load %arg2[%c0, %c0_1] : memref<8x16xbf16, #tpu.memory_space<vmem>>, vector<8x16xbf16>
    %c0_2 = arith.constant 0 : index
    %c0_3 = arith.constant 0 : index
    %4 = vector.load %arg3[%c0_2, %c0_3] : memref<16x32xbf16, #tpu.memory_space<vmem>>, vector<16x32xbf16>
    %cst = arith.constant dense<0.000000e+00> : vector<8x32xf32>
    %5 = tpu.matmul %3, %4, %cst {dimension_numbers = #tpu.dot_dimension_numbers<[1], [0], [0], [1], [0, 0, 1, 1], [], []>} : vector<8x16xbf16>, vector<16x32xbf16>, vector<8x32xf32> -> vector<8x32xf32>
    %c1_i32 = arith.constant 1 : i32
    %6 = arith.muli %arg0, %c1_i32 : i32
    %7 = arith.addi %6, %arg1 : i32
    %c8_i32 = arith.constant 8 : i32
    %8 = arith.muli %7, %c8_i32 : i32
    %9 = tpu.iota {dimensions = array<i32: 0>} : vector<8x1xi32>
    %10 = vector.broadcast %8 : i32 to vector<8x1xi32>
    %11 = arith.addi %10, %9 : vector<8x1xi32>
    %c8_i32_4 = arith.constant 8 : i32
    %12 = vector.broadcast %c8_i32_4 : i32 to vector<8x1xi32>
    %13 = arith.cmpi slt, %11, %12 : vector<8x1xi32>
    %cst_5 = arith.constant 0.000000e+00 : f32
    %14 = vector.shape_cast %13 : vector<8x1xi1> to vector<8x1xi1>
    %15 = vector.broadcast %14 : vector<8x1xi1> to vector<8x32xi1>
    %16 = vector.broadcast %cst_5 : f32 to vector<8x32xf32>
    %17 = arith.select %15, %5, %16 : vector<8x32xi1>, vector<8x32xf32>
    %18 = arith.mulf %5, %5 : vector<8x32xf32>
    %cst_6 = arith.constant 0.000000e+00 : f32
    %19 = vector.shape_cast %13 : vector<8x1xi1> to vector<8x1xi1>
    %20 = vector.broadcast %19 : vector<8x1xi1> to vector<8x32xi1>
    %21 = vector.broadcast %cst_6 : f32 to vector<8x32xf32>
    %22 = arith.select %20, %18, %21 : vector<8x32xi1>, vector<8x32xf32>
    %c0_7 = arith.constant 0 : index
    %c0_8 = arith.constant 0 : index
    %23 = vector.load %arg4[%c0_7, %c0_8] : memref<8x32xf32, #tpu.memory_space<vmem>>, vector<8x32xf32>
    %24 = vector.shape_cast %17 : vector<8x32xf32> to vector<1x8x32xf32>
    %cst_9 = arith.constant dense<0.000000e+00> : vector<8x32xf32>
    %25 = vector.multi_reduction <add>, %24, %cst_9 [0] : vector<1x8x32xf32> to vector<8x32xf32>
    %26 = arith.addf %23, %25 : vector<8x32xf32>
    %c0_10 = arith.constant 0 : index
    %c0_11 = arith.constant 0 : index
    %27 = vector.load %arg4[%c0_10, %c0_11] : memref<8x32xf32, #tpu.memory_space<vmem>>, vector<8x32xf32>
    tpu.vector_store %arg4[%c0_10, %c0_11], %26 {strides = array<i32>} : memref<8x32xf32, #tpu.memory_space<vmem>>, vector<8x32xf32>,
    %c0_12 = arith.constant 0 : index
    %c0_13 = arith.constant 0 : index
    %28 = vector.load %arg5[%c0_12, %c0_13] : memref<8x32xf32, #tpu.memory_space<vmem>>, vector<8x32xf32>
    %29 = vector.shape_cast %22 : vector<8x32xf32> to vector<1x8x32xf32>
    %cst_14 = arith.constant dense<0.000000e+00> : vector<8x32xf32>
    %30 = vector.multi_reduction <add>, %29, %cst_14 [0] : vector<1x8x32xf32> to vector<8x32xf32>
    %31 = arith.addf %28, %30 : vector<8x32xf32>
    %c0_15 = arith.constant 0 : index
    %c0_16 = arith.constant 0 : index
    %32 = vector.load %arg5[%c0_15, %c0_16] : memref<8x32xf32, #tpu.memory_space<vmem>>, vector<8x32xf32>
    tpu.vector_store %arg5[%c0_15, %c0_16], %31 {strides = array<i32>} : memref<8x32xf32, #tpu.memory_space<vmem>>, vector<8x32xf32>,
    return
  }
  func.func @transform_0(%arg0: i32, %arg1: i32) -> (i32, i32) {
    %c1_i32 = arith.constant 1 : i32
    %0 = arith.muli %arg0, %c1_i32 : i32
    %1 = arith.addi %0, %arg1 : i32
    %c0_i32 = arith.constant 0 : i32
    %c0_i32_0 = arith.constant 0 : i32
    return %1, %c0_i32 : i32, i32
  }
  func.func @transform_1(%arg0: i32, %arg1: i32) -> (i32, i32) {
    %c0_i32 = arith.constant 0 : i32
    %c0_i32_0 = arith.constant 0 : i32
    %c0_i32_1 = arith.constant 0 : i32
    return %c0_i32, %c0_i32_0 : i32, i32
  }
  func.func @transform_2(%arg0: i32, %arg1: i32) -> (i32, i32) {
    %c0_i32 = arith.constant 0 : i32
    %c0_i32_0 = arith.constant 0 : i32
    return %arg0, %c0_i32 : i32, i32
  }
  func.func @transform_3(%arg0: i32, %arg1: i32) -> (i32, i32) {
    %c0_i32 = arith.constant 0 : i32
    %c0_i32_0 = arith.constant 0 : i32
    return %arg0, %c0_i32 : i32, i32
  }
}

</mosaic_0001>

<bundles_post_ra>
// kernel: tpu_custom_call.1
= control target key start
LH: loop header
LB: loop body
LE: loop exit
PB: predicated region body
PF: predicated region fallthrough
CT: control target
= control target key end

     0   :  { %9 = vsyncpa [#allocation3], 0  ;;  %s298_s0 = inlined_call_operand.hbm [shape: bf16[8,16], index: 0, kind: input, shape index: {}]   ;;  %s299_s1 = inlined_call_operand.hbm [shape: bf16[16,32], index: 1, kind: input, shape index: {}]   ;;  %s300_s2 = inlined_call_operand.hbm [shape: f32[8,32], index: 2, kind: output, shape index: {0}]   ;;  %s301_s3 = inlined_call_operand.hbm [shape: f32[8,32], index: 3, kind: output, shape index: {1}]  }
   0x1   :  { %10 = vsyncpa [#allocation6], 0 }
   0x2   :  { %11 = vsyncpa [#allocation4], 0 }
   0x3   :  { %12 = vsyncpa [#allocation9], 0  ;;  %s21_s14 = sshll.u32 %s298_s0, 4  ;;  %s255_s15 = smov [#allocation2]   ;;  %s22_s14 = int_to_ptr.hbm [resolvable:$true] %s21_s14 }
   0x4   :  { %s23_s16 = sshll.u32 %s255_s15, 4  ;;  %s31_s19 = sshll.u32 %s299_s1, 4  ;;  %s24_s16 = int_to_ptr.vmem [resolvable:$true] %s23_s16  ;;  %s32_s19 = int_to_ptr.hbm [resolvable:$true] %s31_s19 }
   0x5   :  { %26 = dma.hbm_to_vmem [thread:$0]  %s22_s14, 64, %s24_s16, [#allocation3]  }
   0x6   :  { %s256_s20 = smov [#allocation5]   ;;  %s257_s22 = smov 64  }
   0x7   :  { %s33_s21 = sshll.u32 %s256_s20, 4  ;;  %s258_s23 = smov 4   ;;  %s34_s21 = int_to_ptr.vmem [resolvable:$true] %s33_s21 }
   0x8   :  { %39 = dma.hbm_to_vmem [thread:$0]  %s32_s19, 128, %s34_s21, [#allocation6], %s257_s22, %s257_s22, %s258_s23  }
   0x9   :  { %247 = dma.done.wait [#allocation3], 64  }
   0xa   :  { %248 = vsyncadd [#allocation3], 4294967232 }
   0xb   :  { %249 = dma.done.wait [#allocation6], 128  }
   0xc   :  { %250 = vsyncadd [#allocation6], 4294967168  ;;  %vm54_vm0 = vcmask 261120   ;;  %v259_v0 = vmov 0.0   ;;  %v143_v1 = vld [vmem:[#allocation5] sm:$0xff]  ;;  %vm66_vm1 = vcmask 130048  }
   0xd   :  { %55 = vst.msk [vmem:[#allocation7] sm:$0xff] %vm54_vm0, %v259_v0  ;;  %77 = vmatpush.bf16.msra.mxu0 %v143_v1  ;;  %v57_v2 = vld [vmem:[#allocation2] sm:$0xf]  ;;  %s260_s0 = smov [#allocation7]   ;;  %s111_s26 = sshll.u32 %s300_s2, 4  ;;  %s112_s26 = int_to_ptr.hbm [resolvable:$true] %s111_s26 }
   0xe   :  { %56 = vst.msk [vmem:[#allocation8] sm:$0xff] %vm54_vm0, %v259_v0  ;;  %s109_s1 = sshll.u32 %s260_s0, 4  ;;  %s261_s27 = smov [#allocation8]   ;;  %s110_s1 = int_to_ptr.vmem [resolvable:$true] %s109_s1 }
   0xf   :  { %s120_s28 = sshll.u32 %s261_s27, 4  ;;  %s122_s4 = sshll.u32 %s301_s3, 4  ;;  %s121_s28 = int_to_ptr.vmem [resolvable:$true] %s120_s28  ;;  %s123_s4 = int_to_ptr.hbm [resolvable:$true] %s122_s4 }
  0x10   :  { %142 = vmatmul.msk.bf16.vlgmr.msra.gmra.mxu0 %vm66_vm1, %v57_v2 }
  0x14   :  { %v95_v3 = vld [vmem:[#allocation7] sm:$0xff] }
  0x15   :  { %v100_v5 = vld [vmem:[#allocation8] sm:$0xff] }
  0x8d   :  { %v79_v4 = vpop.f32.mrf.mxu0 }
  0x8e   :  { %v93_v6 = vmul.f32 %v79_v4, %v79_v4  ;;  %v97_v7 = vadd.f32 %v95_v3, %v79_v4 }
  0x90   :  { %v102_v8 = vadd.f32 %v100_v5, %v93_v6  ;;  %99 = vst.msk [vmem:[#allocation7] sm:$0xff] %vm54_vm0, %v97_v7 }
  0x91   :  { %114 = dma.vmem_to_hbm [thread:$0]  %s110_s1, 128, %s112_s26, [#allocation4]  }
  0x92   :  { %103 = vst.msk [vmem:[#allocation8] sm:$0xff] %vm54_vm0, %v102_v8 }
  0x93   :  { %125 = dma.vmem_to_hbm [thread:$0]  %s121_s28, 128, %s123_s4, [#allocation9]  }
  0x95   :  { %v81_v9 = vpop.f32.mrf.mxu0 }
  0x96   :  { %251 = dma.done.wait [#allocation4], 128  }
  0x97   :  { %252 = vsyncadd [#allocation4], 4294967168 }
  0x98   :  { %253 = dma.done.wait [#allocation9], 128  }
  0x99   :  { %254 = vsyncadd [#allocation9], 4294967168 }
  0x9a   :  { %134 = vsyncpa [#allocation3], 1 }
  0x9b   :  { %135 = vsyncpa [#allocation6], 1 }
  0x9c   :  { %136 = vsyncpa [#allocation4], 1 }
  0x9d   :  { %137 = vsyncpa [#allocation9], 1 }

</bundles_post_ra>
